<compile_context>
chip_gen: v6e
topology: v6e:2x2x1
jax: 0.10.0
libtpu: 0.0.40
codegen_flags: <defaults>
</compile_context>

<pallas_src>
import numpy as np
import jax
import jax.numpy as jnp
from jax.experimental import pallas as pl
from jax.experimental.pallas import tpu as pltpu

BN_EPS = 1e-5


def transition_kernel(x_ref, s_ref, b_ref, w_ref, o_ref):
    # x_ref: (TR, 4*Cin)  one row per *output* pixel; the 2x2 patch is packed
    #                     into the channel axis as 4 consecutive Cin-groups.
    # s_ref: (1, 4*Cin)   folded-BN scale (tiled x4)
    # b_ref: (1, 4*Cin)   folded-BN shift (tiled x4)
    # w_ref: (Cin, Cout)  1x1 conv weight (transposed)
    # o_ref: (TR, Cout)
    cin = w_ref.shape[0]

    # BN (folded) + ReLU: one FMA + max per element on the VPU.
    a = jnp.maximum(x_ref[...] * s_ref[...] + b_ref[...], 0.0)

    # AvgPool2d(2,2): the four patch pixels live in four channel groups.
    pooled = (a[:, 0 * cin:1 * cin] + a[:, 1 * cin:2 * cin]
              + a[:, 2 * cin:3 * cin] + a[:, 3 * cin:4 * cin]) * 0.25  # (TR, Cin)

    # 1x1 conv (no bias) on the pooled pixels (conv and avg-pool commute).
    o_ref[...] = jnp.dot(pooled, w_ref[...],
                         preferred_element_type=jnp.float32).astype(o_ref.dtype)


def _pick_row_tile(total_rows, row_bytes, target_bytes=2 * 1024 * 1024):
    """Largest divisor of total_rows that is a multiple of 8 (or the full extent)
    whose input tile stays under target_bytes (leaves headroom for the double
    buffering Pallas adds, incl. on v7x's smaller 64 MiB VMEM)."""
    candidates = [d for d in range(1, total_rows + 1)
                  if total_rows % d == 0 and (d % 8 == 0 or d == total_rows)]
    fitting = [d for d in candidates if d * row_bytes <= target_bytes]
    if fitting:
        return max(fitting)
    return min(candidates)


def transition_forward(x_nchw, gamma, beta, conv_weight):
    """x_nchw: (N, Cin, H, W); conv_weight: (Cout, Cin, 1, 1) -> (N, Cout, H/2, W/2)"""
    N, Cin, H, W = x_nchw.shape
    Cout = conv_weight.shape[0]
    assert H % 2 == 0 and W % 2 == 0, "AvgPool2d(2,2) path assumes even H, W"
    Ho, Wo = H // 2, W // 2

    xf = x_nchw.astype(jnp.float32)

    # --- fold train-mode BatchNorm into per-channel scale/shift (plain JAX) ---
    mean = jnp.mean(xf, axis=(0, 2, 3))
    var = jnp.mean(jnp.square(xf - mean[None, :, None, None]), axis=(0, 2, 3))
    s = gamma.astype(jnp.float32) * jax.lax.rsqrt(var + BN_EPS)        # (Cin,)
    b = beta.astype(jnp.float32) - mean * s                            # (Cin,)

    # --- layout glue: NCHW -> rows of output pixels with 2x2 patch packed into channels ---
    # (N, Cin, H, W) -> (N, H, W, Cin) -> (N, Ho, 2, Wo, 2, Cin)
    #                -> (N, Ho, Wo, 2, 2, Cin) -> (N*Ho*Wo, 4*Cin)
    x_nhwc = jnp.transpose(xf, (0, 2, 3, 1))
    x_packed = (x_nhwc.reshape(N, Ho, 2, Wo, 2, Cin)
                      .transpose(0, 1, 3, 2, 4, 5)
                      .reshape(N * Ho * Wo, 4 * Cin))

    s4 = jnp.tile(s, 4).reshape(1, 4 * Cin)
    b4 = jnp.tile(b, 4).reshape(1, 4 * Cin)
    w = conv_weight[:, :, 0, 0].T.astype(jnp.float32)                  # (Cin, Cout)

    rows = N * Ho * Wo
    row_bytes = 4 * Cin * x_packed.dtype.itemsize
    tr = _pick_row_tile(rows, row_bytes)
    grid = (rows // tr,)

    out_flat = pl.pallas_call(
        transition_kernel,
        out_shape=jax.ShapeDtypeStruct((rows, Cout), jnp.float32),
        grid=grid,
        in_specs=[
            pl.BlockSpec((tr, 4 * Cin), lambda i: (i, 0)),   # activations: tiled
            pl.BlockSpec((1, 4 * Cin), lambda i: (0, 0)),    # scale: VMEM-resident
            pl.BlockSpec((1, 4 * Cin), lambda i: (0, 0)),    # shift: VMEM-resident
            pl.BlockSpec((Cin, Cout), lambda i: (0, 0)),     # weight: VMEM-resident
        ],
        out_specs=pl.BlockSpec((tr, Cout), lambda i: (i, 0)),
        compiler_params=pltpu.CompilerParams(
            dimension_semantics=("parallel",)),
    )(x_packed, s4, b4, w)

    # glue: rows-of-output-pixels -> NCHW
    return jnp.transpose(out_flat.reshape(N, Ho, Wo, Cout), (0, 3, 1, 2))


def transition_reference(x, gamma, beta, conv_weight):
    """Pure-JAX reference matching the PyTorch module's forward (train-mode BN)."""
    mean = x.mean(axis=(0, 2, 3), keepdims=True)
    var = ((x - mean) ** 2).mean(axis=(0, 2, 3), keepdims=True)
    xn = (x - mean) / jnp.sqrt(var + BN_EPS)
    xn = xn * gamma[None, :, None, None] + beta[None, :, None, None]
    a = jnp.maximum(xn, 0.0)
    y = jnp.einsum("nchw,oc->nohw", a, conv_weight[:, :, 0, 0])
    N, Co, H, W = y.shape
    return y.reshape(N, Co, H // 2, 2, W // 2, 2).mean(axis=(3, 5))


if __name__ == "__main__":
    # Small shapes consistent with the module: batch=2, in_channels=4,
    # out_channels=2, spatial 16x16.
    N, Cin, Cout, H, W = 2, 4, 2, 16, 16

    key = jax.random.PRNGKey(0)
    kx, kg, kb, kw = jax.random.split(key, 4)
    x = jax.random.normal(kx, (N, Cin, H, W), dtype=jnp.float32)
    gamma = 1.0 + 0.1 * jax.random.normal(kg, (Cin,), dtype=jnp.float32)
    beta = 0.1 * jax.random.normal(kb, (Cin,), dtype=jnp.float32)
    conv_weight = jax.random.normal(kw, (Cout, Cin, 1, 1), dtype=jnp.float32) / np.sqrt(Cin)

    out = transition_forward(x, gamma, beta, conv_weight)
    out = jax.block_until_ready(out)

    ref = transition_reference(x, gamma, beta, conv_weight)
    np.testing.assert_allclose(np.asarray(out), np.asarray(ref), rtol=1e-4, atol=1e-4)
    assert out.shape == (N, Cout, H // 2, W // 2)

    print("KERNEL_OK")
</pallas_src>

<mosaic_0001>
module attributes {stable_mosaic.version = 11 : i64} {
  func.func @transition_kernel(%arg0: i32, %arg1: memref<128x16xf32, #tpu.memory_space<vmem>>, %arg2: memref<1x16xf32, #tpu.memory_space<vmem>>, %arg3: memref<1x16xf32, #tpu.memory_space<vmem>>, %arg4: memref<4x2xf32, #tpu.memory_space<vmem>>, %arg5: memref<128x2xf32, #tpu.memory_space<vmem>>) attributes {dimension_semantics = [#tpu.dimension_semantics<parallel>], iteration_bounds = array<i64: 1>, scalar_prefetch = 0 : i64, scratch_operands = 0 : i64, tpu.core_type = #tpu.core_type<tc>, window_params = [{transform_indices = @transform_0, window_bounds = array<i64: 128, 16>}, {pipeline_mode = #tpu.pipeline_mode<synchronous>, transform_indices = @transform_1, window_bounds = array<i64: 1, 16>}, {pipeline_mode = #tpu.pipeline_mode<synchronous>, transform_indices = @transform_2, window_bounds = array<i64: 1, 16>}, {pipeline_mode = #tpu.pipeline_mode<synchronous>, transform_indices = @transform_3, window_bounds = array<i64: 4, 2>}, {transform_indices = @transform_4, window_bounds = array<i64: 128, 2>}]} {
    %c0 = arith.constant 0 : index
    %c0_0 = arith.constant 0 : index
    %0 = vector.load %arg1[%c0, %c0_0] : memref<128x16xf32, #tpu.memory_space<vmem>>, vector<128x16xf32>
    %c0_1 = arith.constant 0 : index
    %c0_2 = arith.constant 0 : index
    %1 = vector.load %arg2[%c0_1, %c0_2] : memref<1x16xf32, #tpu.memory_space<vmem>>, vector<1x16xf32>
    %2 = vector.broadcast %1 : vector<1x16xf32> to vector<128x16xf32>
    %3 = arith.mulf %0, %2 : vector<128x16xf32>
    %c0_3 = arith.constant 0 : index
    %c0_4 = arith.constant 0 : index
    %4 = vector.load %arg3[%c0_3, %c0_4] : memref<1x16xf32, #tpu.memory_space<vmem>>, vector<1x16xf32>
    %5 = vector.broadcast %4 : vector<1x16xf32> to vector<128x16xf32>
    %6 = arith.addf %3, %5 : vector<128x16xf32>
    %cst = arith.constant 0.000000e+00 : f32
    %7 = vector.broadcast %cst : f32 to vector<128x16xf32>
    %8 = arith.maximumf %6, %7 : vector<128x16xf32>
    %9 = vector.extract_strided_slice %8 {offsets = [0, 0], sizes = [128, 4], strides = [1, 1]} : vector<128x16xf32> to vector<128x4xf32>
    %10 = vector.extract_strided_slice %8 {offsets = [0, 4], sizes = [128, 4], strides = [1, 1]} : vector<128x16xf32> to vector<128x4xf32>
    %11 = arith.addf %9, %10 : vector<128x4xf32>
    %12 = vector.extract_strided_slice %8 {offsets = [0, 8], sizes = [128, 4], strides = [1, 1]} : vector<128x16xf32> to vector<128x4xf32>
    %13 = arith.addf %11, %12 : vector<128x4xf32>
    %14 = vector.extract_strided_slice %8 {offsets = [0, 12], sizes = [128, 4], strides = [1, 1]} : vector<128x16xf32> to vector<128x4xf32>
    %15 = arith.addf %13, %14 : vector<128x4xf32>
    %cst_5 = arith.constant 2.500000e-01 : f32
    %16 = vector.broadcast %cst_5 : f32 to vector<128x4xf32>
    %17 = arith.mulf %15, %16 : vector<128x4xf32>
    %c0_6 = arith.constant 0 : index
    %c0_7 = arith.constant 0 : index
    %18 = vector.load %arg4[%c0_6, %c0_7] : memref<4x2xf32, #tpu.memory_space<vmem>>, vector<4x2xf32>
    %cst_8 = arith.constant dense<0.000000e+00> : vector<128x2xf32>
    %19 = tpu.matmul %17, %18, %cst_8 {dimension_numbers = #tpu.dot_dimension_numbers<[1], [0], [0], [1], [0, 0, 1, 1], [], []>} : vector<128x4xf32>, vector<4x2xf32>, vector<128x2xf32> -> vector<128x2xf32>
    %c0_9 = arith.constant 0 : index
    %c0_10 = arith.constant 0 : index
    %20 = vector.load %arg5[%c0_9, %c0_10] : memref<128x2xf32, #tpu.memory_space<vmem>>, vector<128x2xf32>
    tpu.vector_store %arg5[%c0_9, %c0_10], %19 {strides = array<i32>} : memref<128x2xf32, #tpu.memory_space<vmem>>, vector<128x2xf32>,
    return
  }
  func.func @transform_0(%arg0: i32) -> (i32, i32) {
    %c0_i32 = arith.constant 0 : i32
    %c0_i32_0 = arith.constant 0 : i32
    return %arg0, %c0_i32 : i32, i32
  }
  func.func @transform_1(%arg0: i32) -> (i32, i32) {
    %c0_i32 = arith.constant 0 : i32
    %c0_i32_0 = arith.constant 0 : i32
    %c0_i32_1 = arith.constant 0 : i32
    return %c0_i32, %c0_i32_0 : i32, i32
  }
  func.func @transform_2(%arg0: i32) -> (i32, i32) {
    %c0_i32 = arith.constant 0 : i32
    %c0_i32_0 = arith.constant 0 : i32
    %c0_i32_1 = arith.constant 0 : i32
    return %c0_i32, %c0_i32_0 : i32, i32
  }
  func.func @transform_3(%arg0: i32) -> (i32, i32) {
    %c0_i32 = arith.constant 0 : i32
    %c0_i32_0 = arith.constant 0 : i32
    %c0_i32_1 = arith.constant 0 : i32
    return %c0_i32, %c0_i32_0 : i32, i32
  }
  func.func @transform_4(%arg0: i32) -> (i32, i32) {
    %c0_i32 = arith.constant 0 : i32
    %c0_i32_0 = arith.constant 0 : i32
    return %arg0, %c0_i32 : i32, i32
  }
}

</mosaic_0001>

<bundles_post_ra>
// kernel: tpu_custom_call.1
= control target key start
LH: loop header
LB: loop body
LE: loop exit
PB: predicated region body
PF: predicated region fallthrough
CT: control target
= control target key end

     0   :  { %s606_s5 = smov 124   ;;  %s607_s12 = smov 120   ;;  %vm369_vm0 = vcmask 1043456   ;;  %vm320_vm1 = vcmask 31744   ;;  %vm518_vm2 = vcmask 15360   ;;  %s963_s0 = inlined_call_operand.vmem [shape: f32[128,16], index: 0, kind: input, shape index: {}]   ;;  %s964_s1 = inlined_call_operand.vmem [shape: f32[1,16], index: 1, kind: input, shape index: {}]   ;;  %s965_s2 = inlined_call_operand.vmem [shape: f32[1,16], index: 2, kind: input, shape index: {}]   ;;  %s966_s3 = inlined_call_operand.vmem [shape: f32[4,2], index: 3, kind: input, shape index: {}]   ;;  %s967_s4 = inlined_call_operand.vmem [shape: f32[128,2], index: 4, kind: output, shape index: {}]  }
   0x1   :  { %v18_v0 = vld [vmem:[%s963_s0 + $0x8] sm:$0xff]  ;;  %v640_v1 = vld [vmem:[%s964_s1] ss:$0 sm:$0xff]  ;;  %v31_v16 = vld [vmem:[%s963_s0 + $0x70] sm:$0xff]  ;;  %s608_s19 = smov 116  }
   0x2   :  { %v645_v2 = vld [vmem:[%s965_s2] ss:$0 sm:$0xff]  ;;  %v41_v3 = vmul.f32 %v640_v1, %v18_v0  ;;  %v26_v5 = vld [vmem:[%s963_s0 + $0x48] sm:$0xff]  ;;  %v23_v17 = vld [vmem:[%s963_s0 + $0x30] sm:$0xff]  ;;  %v54_v24 = vmul.f32 %v640_v1, %v31_v16 }
   0x3   :  { %v17_v4 = vld [vmem:[%s963_s0] sm:$0xff]  ;;  %v49_v8 = vmul.f32 %v640_v1, %v26_v5  ;;  %v32_v18 = vld [vmem:[%s963_s0 + $0x78] sm:$0xff]  ;;  %v27_v22 = vld [vmem:[%s963_s0 + $0x50] sm:$0xff]  ;;  %v46_v25 = vmul.f32 %v640_v1, %v23_v17 }
   0x4   :  { %v25_v6 = vld [vmem:[%s963_s0 + $0x40] sm:$0xff]  ;;  %v40_v7 = vmul.f32 %v640_v1, %v17_v4  ;;  %v64_v10 = vadd.f32 %v645_v2, %v41_v3  ;;  %v24_v20 = vld [vmem:[%s963_s0 + $0x38] sm:$0xff]  ;;  %v19_v23 = vld [vmem:[%s963_s0 + $0x10] sm:$0xff]  ;;  %v55_v26 = vmul.f32 %v640_v1, %v32_v18  ;;  %v50_v28 = vmul.f32 %v640_v1, %v27_v22 }
   0x5   :  { %v48_v9 = vmul.f32 %v640_v1, %v25_v6  ;;  %v72_v12 = vadd.f32 %v645_v2, %v49_v8  ;;  %v47_v27 = vmul.f32 %v640_v1, %v24_v20  ;;  %v702_v29 = vadd.f32 %v645_v2, %v54_v24  ;;  %v28_v36 = vld [vmem:[%s963_s0 + $0x58] sm:$0xff]  ;;  %v319_v44 = vld [vmem:[%s966_s3] sm:$0xf]  ;;  %v30_v53 = vld [vmem:[%s963_s0 + $0x68] sm:$0xff] }
   0x6   :  { %v63_v11 = vadd.f32 %v645_v2, %v40_v7  ;;  %v664_v14 = vmax.f32 %v64_v10, 0.0  ;;  %v705_v30 = vadd.f32 %v645_v2, %v46_v25  ;;  %v708_v31 = vadd.f32 %v645_v2, %v55_v26  ;;  %v20_v37 = vld [vmem:[%s963_s0 + $0x18] sm:$0xff]  ;;  %575 = vmatprep.subr.msk.mxu0 %vm369_vm0, %v319_v44  ;;  %601 = vmatprep.subr.msk.mxu1 %vm369_vm0, %v319_v44  ;;  %v29_v47 = vld [vmem:[%s963_s0 + $0x60] sm:$0xff]  ;;  %v22_v54 = vld [vmem:[%s963_s0 + $0x28] sm:$0xff] }
   0x7   :  { %v71_v13 = vadd.f32 %v645_v2, %v48_v9  ;;  %v679_v19 = vmax.f32 %v72_v12, 0.0  ;;  %v42_v32 = vmul.f32 %v640_v1, %v19_v23  ;;  %v714_v33 = vadd.f32 %v645_v2, %v47_v27  ;;  %576 = vmatpush3.msk.msra.mxu0 %vm369_vm0, %v319_v44  ;;  %602 = vmatpush3.msk.msra.mxu1 %vm369_vm0, %v319_v44  ;;  %v21_v48 = vld [vmem:[%s963_s0 + $0x20] sm:$0xff] }
   0x8   :  { %v666_v15 = vmax.f32 %v63_v11, 0.0  ;;  %113 = vrot.lane.b32.xlu1 %v664_v14, %s606_s5  ;;  %v73_v34 = vadd.f32 %v645_v2, %v50_v28  ;;  %v51_v39 = vmul.f32 %v640_v1, %v28_v36  ;;  %v43_v41 = vmul.f32 %v640_v1, %v20_v37 }
   0x9   :  { %v686_v21 = vmax.f32 %v71_v13, 0.0  ;;  %v65_v35 = vadd.f32 %v645_v2, %v42_v32  ;;  %v52_v49 = vmul.f32 %v640_v1, %v29_v47  ;;  %v44_v50 = vmul.f32 %v640_v1, %v21_v48 }
   0xa   :  { %111 = vrot.lane.b32.xlu0 %v666_v15, %s606_s5  ;;  %v730_v38 = vmax.f32 %v73_v34, 0.0  ;;  %v74_v42 = vadd.f32 %v645_v2, %v51_v39  ;;  %v66_v43 = vadd.f32 %v645_v2, %v43_v41  ;;  %v53_v56 = vmul.f32 %v640_v1, %v30_v53 }
   0xb   :  { %v735_v40 = vmax.f32 %v65_v35, 0.0  ;;  %v75_v51 = vadd.f32 %v645_v2, %v52_v49  ;;  %v67_v52 = vadd.f32 %v645_v2, %v44_v50  ;;  %v45_v58 = vmul.f32 %v640_v1, %v22_v54 }
   0xc   :  { %129 = vrot.lane.b32.xlu1 %v679_v19, %s606_s5  ;;  %v749_v45 = vmax.f32 %v74_v42, 0.0  ;;  %v753_v46 = vmax.f32 %v66_v43, 0.0  ;;  %v76_v59 = vadd.f32 %v645_v2, %v53_v56  ;;  %v822_v63 = vmax.f32 %v702_v29, 0.0 }
   0xd   :  { %v785_v55 = vmax.f32 %v75_v51, 0.0  ;;  %v790_v57 = vmax.f32 %v67_v52, 0.0  ;;  %v68_v60 = vadd.f32 %v645_v2, %v45_v58  ;;  %v827_v0 = vmax.f32 %v705_v30, 0.0 }
   0xe   :  { %127 = vrot.lane.b32.xlu0 %v686_v21, %s606_s5  ;;  %v801_v61 = vmax.f32 %v76_v59, 0.0  ;;  %v836_v1 = vmax.f32 %v708_v31, 0.0  ;;  %v841_v2 = vmax.f32 %v714_v33, 0.0 }
   0xf   :  { %v805_v62 = vmax.f32 %v68_v60, 0.0 }
  0x10   :  { %191 = vrot.lane.b32.xlu1 %v686_v21, %s607_s12 }
  0x12   :  { %175 = vrot.lane.b32.xlu0 %v666_v15, %s607_s12 }
  0x14   :  { %193 = vrot.lane.b32.xlu1 %v679_v19, %s607_s12 }
  0x16   :  { %177 = vrot.lane.b32.xlu0 %v664_v14, %s607_s12 }
  0x18   :  { %131 = vrot.lane.b32.xlu1 %v730_v38, %s606_s5 }
  0x1a   :  { %115 = vrot.lane.b32.xlu0 %v735_v40, %s606_s5 }
  0x1c   :  { %255 = vrot.lane.b32.xlu1 %v686_v21, %s608_s19 }
  0x1e   :  { %239 = vrot.lane.b32.xlu0 %v666_v15, %s608_s19 }
  0x20   :  { %133 = vrot.lane.b32.xlu1 %v749_v45, %s606_s5 }
  0x22   :  { %117 = vrot.lane.b32.xlu0 %v753_v46, %s606_s5 }
  0x24   :  { %257 = vrot.lane.b32.xlu1 %v679_v19, %s608_s19 }
  0x26   :  { %241 = vrot.lane.b32.xlu0 %v664_v14, %s608_s19 }
  0x28   :  { %195 = vrot.lane.b32.xlu1 %v730_v38, %s607_s12 }
  0x2a   :  { %179 = vrot.lane.b32.xlu0 %v735_v40, %s607_s12 }
  0x2c   :  { %197 = vrot.lane.b32.xlu1 %v749_v45, %s607_s12 }
  0x2e   :  { %181 = vrot.lane.b32.xlu0 %v753_v46, %s607_s12 }
  0x30   :  { %135 = vrot.lane.b32.xlu1 %v785_v55, %s606_s5 }
  0x32   :  { %119 = vrot.lane.b32.xlu0 %v790_v57, %s606_s5 }
  0x34   :  { %259 = vrot.lane.b32.xlu1 %v730_v38, %s608_s19 }
  0x36   :  { %243 = vrot.lane.b32.xlu0 %v735_v40, %s608_s19 }
  0x38   :  { %137 = vrot.lane.b32.xlu1 %v801_v61, %s606_s5 }
  0x3a   :  { %121 = vrot.lane.b32.xlu0 %v805_v62, %s606_s5 }
  0x3c   :  { %261 = vrot.lane.b32.xlu1 %v749_v45, %s608_s19 }
  0x3e   :  { %245 = vrot.lane.b32.xlu0 %v753_v46, %s608_s19 }
  0x40   :  { %199 = vrot.lane.b32.xlu1 %v785_v55, %s607_s12 }
  0x42   :  { %183 = vrot.lane.b32.xlu0 %v790_v57, %s607_s12 }
  0x44   :  { %201 = vrot.lane.b32.xlu1 %v801_v61, %s607_s12 }
  0x46   :  { %185 = vrot.lane.b32.xlu0 %v805_v62, %s607_s12 }
  0x48   :  { %139 = vrot.lane.b32.xlu1 %v822_v63, %s606_s5 }
  0x4a   :  { %123 = vrot.lane.b32.xlu0 %v827_v0, %s606_s5 }
  0x4c   :  { %263 = vrot.lane.b32.xlu1 %v785_v55, %s608_s19 }
  0x4e   :  { %247 = vrot.lane.b32.xlu0 %v790_v57, %s608_s19 }
  0x50   :  { %141 = vrot.lane.b32.xlu1 %v836_v1, %s606_s5 }
  0x52   :  { %125 = vrot.lane.b32.xlu0 %v841_v2, %s606_s5 }
  0x54   :  { %265 = vrot.lane.b32.xlu1 %v801_v61, %s608_s19 }
  0x56   :  { %249 = vrot.lane.b32.xlu0 %v805_v62, %s608_s19 }
  0x58   :  { %203 = vrot.lane.b32.xlu1 %v822_v63, %s607_s12 }
  0x5a   :  { %187 = vrot.lane.b32.xlu0 %v827_v0, %s607_s12 }
  0x5c   :  { %205 = vrot.lane.b32.xlu1 %v836_v1, %s607_s12 }
  0x5e   :  { %189 = vrot.lane.b32.xlu0 %v841_v2, %s607_s12 }
  0x60   :  { %267 = vrot.lane.b32.xlu1 %v822_v63, %s608_s19 }
  0x62   :  { %251 = vrot.lane.b32.xlu0 %v827_v0, %s608_s19 }
  0x64   :  { %269 = vrot.lane.b32.xlu1 %v836_v1, %s608_s19 }
  0x66   :  { %253 = vrot.lane.b32.xlu0 %v841_v2, %s608_s19 }
  0x7a   :  { %v114_v3 = vpop.permute.xlu1 %113 }
  0x7c   :  { %v112_v4 = vpop.permute.xlu0 %111 }
  0x7d   :  { %v159_v16 = vadd.f32 %v112_v4, %v666_v15 }
  0x7e   :  { %v130_v5 = vpop.permute.xlu1 %129 }
  0x7f   :  { %v168_v28 = vadd.f32 %v130_v5, %v679_v19 }
  0x80   :  { %v128_v6 = vpop.permute.xlu0 %127 }
  0x81   :  { %v167_v12 = vadd.f32 %v128_v6, %v686_v21  ;;  %v160_v21 = vadd.f32 %v114_v3, %v664_v14 }
  0x82   :  { %v192_v7 = vpop.permute.xlu1 %191 }
  0x83   :  { %v231_v17 = vadd.f32 %v192_v7, %v167_v12 }
  0x84   :  { %v176_v8 = vpop.permute.xlu0 %175 }
  0x85   :  { %v223_v18 = vadd.f32 %v176_v8, %v159_v16 }
  0x86   :  { %v194_v9 = vpop.permute.xlu1 %193 }
  0x87   :  { %v232_v15 = vadd.f32 %v194_v9, %v168_v28 }
  0x88   :  { %v178_v10 = vpop.permute.xlu0 %177 }
  0x89   :  { %v224_v30 = vadd.f32 %v178_v10, %v160_v21 }
  0x8a   :  { %v132_v11 = vpop.permute.xlu1 %131 }
  0x8b   :  { %v169_v14 = vadd.f32 %v132_v11, %v730_v38 }
  0x8c   :  { %v116_v13 = vpop.permute.xlu0 %115 }
  0x8d   :  { %v161_v44 = vadd.f32 %v116_v13, %v735_v40 }
  0x8e   :  { %v256_v20 = vpop.permute.xlu1 %255 }
  0x8f   :  { %v295_v22 = vadd.f32 %v256_v20, %v231_v17 }
  0x90   :  { %v240_v23 = vpop.permute.xlu0 %239 }
  0x91   :  { %v287_v24 = vadd.f32 %v240_v23, %v223_v18  ;;  %v311_v25 = vmul.f32 0.25, %v295_v22 }
  0x92   :  { %v134_v27 = vpop.permute.xlu1 %133 }
  0x93   :  { %v303_v26 = vmul.f32 0.25, %v287_v24  ;;  %589 = vmatprep.mubr.msk.f32.mxu1 %vm320_vm1, %v311_v25  ;;  %v170_v58 = vadd.f32 %v134_v27, %v749_v45 }
  0x94   :  { %v118_v29 = vpop.permute.xlu0 %117 }
  0x95   :  { %577 = vmatprep.mubr.msk.f32.mxu0 %vm320_vm1, %v303_v26  ;;  %v162_v60 = vadd.f32 %v118_v29, %v753_v46 }
  0x96   :  { %v258_v31 = vpop.permute.xlu1 %257 }
  0x97   :  { %v296_v32 = vadd.f32 %v258_v31, %v232_v15 }
  0x98   :  { %v242_v33 = vpop.permute.xlu0 %241 }
  0x99   :  { %v288_v34 = vadd.f32 %v242_v33, %v224_v30  ;;  %v312_v35 = vmul.f32 0.25, %v296_v32 }
  0x9a   :  { %v196_v37 = vpop.permute.xlu1 %195 }
  0x9b   :  { %v304_v36 = vmul.f32 0.25, %v288_v34  ;;  %590 = vmatmul.mubr.msk.f32.vlgmr.msra.gmra.mxu1 %vm320_vm1, %v312_v35  ;;  %v233_v47 = vadd.f32 %v196_v37, %v169_v14 }
  0x9c   :  { %v180_v39 = vpop.permute.xlu0 %179 }
  0x9d   :  { %578 = vmatmul.mubr.msk.f32.vlgmr.msra.gmra.mxu0 %vm320_vm1, %v304_v36  ;;  %v225_v48 = vadd.f32 %v180_v39, %v161_v44 }
  0x9e   :  { %v198_v19 = vpop.permute.xlu1 %197 }
  0x9f   :  { %v234_v38 = vadd.f32 %v198_v19, %v170_v58 }
  0xa0   :  { %v182_v41 = vpop.permute.xlu0 %181 }
  0xa1   :  { %v226_v40 = vadd.f32 %v182_v41, %v162_v60 }
  0xa2   :  { %v136_v42 = vpop.permute.xlu1 %135 }
  0xa3   :  { %v171_v46 = vadd.f32 %v136_v42, %v785_v55 }
  0xa4   :  { %v120_v43 = vpop.permute.xlu0 %119 }
  0xa5   :  { %v163_v16 = vadd.f32 %v120_v43, %v790_v57 }
  0xa6   :  { %v260_v49 = vpop.permute.xlu1 %259 }
  0xa7   :  { %v297_v50 = vadd.f32 %v260_v49, %v233_v47 }
  0xa8   :  { %v244_v51 = vpop.permute.xlu0 %243 }
  0xa9   :  { %v289_v52 = vadd.f32 %v244_v51, %v225_v48  ;;  %v313_v53 = vmul.f32 0.25, %v297_v50 }
  0xaa   :  { %v138_v56 = vpop.permute.xlu1 %137 }
  0xab   :  { %v305_v54 = vmul.f32 0.25, %v289_v52  ;;  %592 = vmatprep.mubr.msk.f32.mxu1 %vm320_vm1, %v313_v53  ;;  %v172_v28 = vadd.f32 %v138_v56, %v801_v61 }
  0xac   :  { %v122_v59 = vpop.permute.xlu0 %121 }
  0xad   :  { %580 = vmatprep.mubr.msk.f32.mxu0 %vm320_vm1, %v305_v54  ;;  %v164_v21 = vadd.f32 %v122_v59, %v805_v62 }
  0xae   :  { %v262_v3 = vpop.permute.xlu1 %261 }
  0xaf   :  { %v298_v4 = vadd.f32 %v262_v3, %v234_v38 }
  0xb0   :  { %v246_v5 = vpop.permute.xlu0 %245 }
  0xb1   :  { %v290_v6 = vadd.f32 %v246_v5, %v226_v40  ;;  %v314_v7 = vmul.f32 0.25, %v298_v4 }
  0xb2   :  { %v200_v9 = vpop.permute.xlu1 %199 }
  0xb3   :  { %v306_v8 = vmul.f32 0.25, %v290_v6  ;;  %593 = vmatmul.mubr.msk.f32.gmra.mxu1 %vm320_vm1, %v314_v7  ;;  %v235_v17 = vadd.f32 %v200_v9, %v171_v46 }
  0xb4   :  { %v184_v10 = vpop.permute.xlu0 %183 }
  0xb5   :  { %581 = vmatmul.mubr.msk.f32.gmra.mxu0 %vm320_vm1, %v306_v8  ;;  %v227_v18 = vadd.f32 %v184_v10, %v163_v16 }
  0xb6   :  { %v202_v45 = vpop.permute.xlu1 %201 }
  0xb7   :  { %v236_v55 = vadd.f32 %v202_v45, %v172_v28 }
  0xb8   :  { %v186_v11 = vpop.permute.xlu0 %185 }
  0xb9   :  { %v228_v57 = vadd.f32 %v186_v11, %v164_v21 }
  0xba   :  { %v140_v12 = vpop.permute.xlu1 %139 }
  0xbb   :  { %v173_v37 = vadd.f32 %v140_v12, %v822_v63 }
  0xbc   :  { %v124_v13 = vpop.permute.xlu0 %123 }
  0xbd   :  { %v165_v39 = vadd.f32 %v124_v13, %v827_v0 }
  0xbe   :  { %v264_v20 = vpop.permute.xlu1 %263 }
  0xbf   :  { %v299_v22 = vadd.f32 %v264_v20, %v235_v17 }
  0xc0   :  { %v248_v23 = vpop.permute.xlu0 %247 }
  0xc1   :  { %v291_v24 = vadd.f32 %v248_v23, %v227_v18  ;;  %v315_v25 = vmul.f32 0.25, %v299_v22 }
  0xc2   :  { %v142_v27 = vpop.permute.xlu1 %141 }
  0xc3   :  { %v307_v26 = vmul.f32 0.25, %v291_v24  ;;  %595 = vmatprep.mubr.msk.f32.mxu1 %vm320_vm1, %v315_v25  ;;  %v174_v14 = vadd.f32 %v142_v27, %v836_v1 }
  0xc4   :  { %v126_v29 = vpop.permute.xlu0 %125 }
  0xc5   :  { %583 = vmatprep.mubr.msk.f32.mxu0 %vm320_vm1, %v307_v26  ;;  %v166_v47 = vadd.f32 %v126_v29, %v841_v2 }
  0xc6   :  { %v266_v15 = vpop.permute.xlu1 %265 }
  0xc7   :  { %v300_v30 = vadd.f32 %v266_v15, %v236_v55 }
  0xc8   :  { %v250_v31 = vpop.permute.xlu0 %249 }
  0xc9   :  { %v292_v32 = vadd.f32 %v250_v31, %v228_v57  ;;  %v316_v33 = vmul.f32 0.25, %v300_v30 }
  0xca   :  { %v204_v35 = vpop.permute.xlu1 %203 }
  0xcb   :  { %v308_v34 = vmul.f32 0.25, %v292_v32  ;;  %596 = vmatmul.mubr.msk.f32.gmra.mxu1 %vm320_vm1, %v316_v33  ;;  %v237_v19 = vadd.f32 %v204_v35, %v173_v37 }
  0xcc   :  { %v188_v36 = vpop.permute.xlu0 %187 }
  0xcd   :  { %584 = vmatmul.mubr.msk.f32.gmra.mxu0 %vm320_vm1, %v308_v34  ;;  %v229_v41 = vadd.f32 %v188_v36, %v165_v39 }
  0xce   :  { %v206_v61 = vpop.permute.xlu1 %205 }
  0xcf   :  { %v238_v49 = vadd.f32 %v206_v61, %v174_v14 }
  0xd0   :  { %v190_v62 = vpop.permute.xlu0 %189 }
  0xd1   :  { %v230_v51 = vadd.f32 %v190_v62, %v166_v47 }
  0xd2   :  { %v268_v42 = vpop.permute.xlu1 %267 }
  0xd3   :  { %v301_v43 = vadd.f32 %v268_v42, %v237_v19 }
  0xd4   :  { %v252_v44 = vpop.permute.xlu0 %251 }
  0xd5   :  { %v293_v48 = vadd.f32 %v252_v44, %v229_v41  ;;  %v317_v50 = vmul.f32 0.25, %v301_v43 }
  0xd6   :  { %v270_v53 = vpop.permute.xlu1 %269 }
  0xd7   :  { %v309_v52 = vmul.f32 0.25, %v293_v48  ;;  %v302_v54 = vadd.f32 %v270_v53, %v238_v49  ;;  %598 = vmatprep.mubr.msk.f32.mxu1 %vm320_vm1, %v317_v50 }
  0xd8   :  { %v254_v63 = vpop.permute.xlu0 %253 }
  0xd9   :  { %v294_v0 = vadd.f32 %v254_v63, %v230_v51  ;;  %586 = vmatprep.mubr.msk.f32.mxu0 %vm320_vm1, %v309_v52  ;;  %v318_v56 = vmul.f32 0.25, %v302_v54 }
  0xdb   :  { %v310_v58 = vmul.f32 0.25, %v294_v0  ;;  %599 = vmatmul.mubr.msk.f32.gmra.mxu1 %vm320_vm1, %v318_v56 }
  0xdd   :  { %587 = vmatmul.mubr.msk.f32.gmra.mxu0 %vm320_vm1, %v310_v58 }
 0x15b   :  { %v591_v1 = vpop.f32.mrf.mxu1 }
 0x15c   :  { %528 = vst.msk [vmem:[%s967_s4 + $0x48] sm:$0xff] %vm518_vm2, %v591_v1 }
 0x15d   :  { %v579_v2 = vpop.f32.mrf.mxu0  ;;  %v479_v59 = vpop.f32.mrf.mxu1 }
 0x15e   :  { %520 = vst.msk [vmem:[%s967_s4 + $0x8] sm:$0xff] %vm518_vm2, %v579_v2  ;;  %527 = vst.msk [vmem:[%s967_s4 + $0x40] sm:$0xff] %vm518_vm2, %v479_v59 }
 0x15f   :  { %v439_v60 = vpop.f32.mrf.mxu0 }
 0x160   :  { %519 = vst.msk [vmem:[%s967_s4] sm:$0xff] %vm518_vm2, %v439_v60 }
 0x173   :  { %v594_v38 = vpop.f32.mrf.mxu1 }
 0x174   :  { %530 = vst.msk [vmem:[%s967_s4 + $0x58] sm:$0xff] %vm518_vm2, %v594_v38 }
 0x175   :  { %v582_v40 = vpop.f32.mrf.mxu0  ;;  %v489_v3 = vpop.f32.mrf.mxu1 }
 0x176   :  { %522 = vst.msk [vmem:[%s967_s4 + $0x18] sm:$0xff] %vm518_vm2, %v582_v40  ;;  %529 = vst.msk [vmem:[%s967_s4 + $0x50] sm:$0xff] %vm518_vm2, %v489_v3 }
 0x177   :  { %v449_v4 = vpop.f32.mrf.mxu0 }
 0x178   :  { %521 = vst.msk [vmem:[%s967_s4 + $0x10] sm:$0xff] %vm518_vm2, %v449_v4 }
 0x18b   :  { %v597_v5 = vpop.f32.mrf.mxu1 }
 0x18c   :  { %532 = vst.msk [vmem:[%s967_s4 + $0x68] sm:$0xff] %vm518_vm2, %v597_v5 }
 0x18d   :  { %v585_v6 = vpop.f32.mrf.mxu0  ;;  %v499_v7 = vpop.f32.mrf.mxu1 }
 0x18e   :  { %524 = vst.msk [vmem:[%s967_s4 + $0x28] sm:$0xff] %vm518_vm2, %v585_v6  ;;  %531 = vst.msk [vmem:[%s967_s4 + $0x60] sm:$0xff] %vm518_vm2, %v499_v7 }
 0x18f   :  { %v459_v8 = vpop.f32.mrf.mxu0 }
 0x190   :  { %523 = vst.msk [vmem:[%s967_s4 + $0x20] sm:$0xff] %vm518_vm2, %v459_v8 }
 0x19b   :  { %v600_v9 = vpop.f32.mrf.mxu1 }
 0x19c   :  { %534 = vst.msk [vmem:[%s967_s4 + $0x78] sm:$0xff] %vm518_vm2, %v600_v9 }
 0x19d   :  { %v588_v10 = vpop.f32.mrf.mxu0  ;;  %v509_v45 = vpop.f32.mrf.mxu1 }
 0x19e   :  { %526 = vst.msk [vmem:[%s967_s4 + $0x38] sm:$0xff] %vm518_vm2, %v588_v10  ;;  %533 = vst.msk [vmem:[%s967_s4 + $0x70] sm:$0xff] %vm518_vm2, %v509_v45 }
 0x19f   :  { %v469_v11 = vpop.f32.mrf.mxu0 }
 0x1a0   :  { %525 = vst.msk [vmem:[%s967_s4 + $0x30] sm:$0xff] %vm518_vm2, %v469_v11 }

</bundles_post_ra>
